<compile_context>
chip_gen: v5e
topology: v5e:2x2
jax: 0.10.0
libtpu: 0.0.40
codegen_flags: <defaults>
</compile_context>

<pallas_src>
import jax
import jax.numpy as jnp
from jax.experimental import pallas as pl
from jax.experimental.pallas import tpu as pltpu

LANE = 128
_MEGACORE_SPLIT_MIN = 512  # above this batch, keep >= 2 grid steps (v7x megacore)


def _round_up(x: int, m: int) -> int:
    return (x + m - 1) // m * m


def _pick_block_batch(batch: int, block_batch: int) -> int:
    """Batch tile: as large as requested (multiple of 8 sublanes), but when the
    batch is big enough, cap at ceil(batch/2) so the 'parallel' batch axis can
    be sharded across v7x's two TensorCores."""
    bm = min(block_batch, batch)
    if batch >= _MEGACORE_SPLIT_MIN:
        bm = min(bm, -(-batch // 2))  # ceil(batch / 2)
    return max(8, _round_up(bm, 8))


def policy_kernel(obs_ref, w1_ref, b1_ref, w2_ref, b2_ref, w3_ref, b3_ref,
                  loc_ref, scale_ref, out_ref):
    # Cast obs to bf16 in-kernel (VPU) -> no wrapper-side padded bf16 copy.
    obs = obs_ref[...].astype(jnp.bfloat16)
    # Hidden layer 1: bf16 MXU matmul, f32 accumulation; epilogue in f32.
    h1 = jnp.dot(obs, w1_ref[...], preferred_element_type=jnp.float32)
    h1 = jnp.maximum(h1 + b1_ref[...], 0.0)
    # Hidden layer 2.
    h2 = jnp.dot(h1.astype(jnp.bfloat16), w2_ref[...],
                 preferred_element_type=jnp.float32)
    h2 = jnp.maximum(h2 + b2_ref[...], 0.0)
    # Output layer (N = act_dim, unpadded) + tanh squash onto action bounds.
    z = jnp.dot(h2.astype(jnp.bfloat16), w3_ref[...],
                preferred_element_type=jnp.float32) + b3_ref[...]
    act = loc_ref[...] + scale_ref[...] * jnp.tanh(z)
    out_ref[...] = act.astype(out_ref.dtype)


def deterministic_policy_action(obs, params, *, block_batch=512):
    """Fused deterministic-policy forward over a (possibly large) batch."""
    w1, b1, w2, b2, w3, b3, loc, scale = params
    batch, obs_dim = obs.shape
    h1_dim = w1.shape[1]
    h2_dim = w2.shape[1]
    act_dim = w3.shape[1]

    # Hidden dims padded to 128 lanes so the intermediate activations and the
    # MXU N/K dims are full-lane; obs_dim (first K) and act_dim (output N) are
    # kept exactly as-is (block last dim == full array dim is legal).
    d_h1 = _round_up(h1_dim, LANE)
    d_h2 = _round_up(h2_dim, LANE)

    bm = _pick_block_batch(batch, block_batch)
    grid = (pl.cdiv(batch, bm),)

    def pad2(x, rows, cols, dtype):
        x = jnp.atleast_2d(x)
        buf = jnp.zeros((rows, cols), dtype)
        return buf.at[:x.shape[0], :x.shape[1]].set(x.astype(dtype))

    # Tiny parameters: pad + cast once in the wrapper (VMEM-resident in kernel).
    w1_p = pad2(w1, obs_dim, d_h1, jnp.bfloat16)
    b1_p = pad2(b1, 1, d_h1, jnp.float32)
    w2_p = pad2(w2, d_h1, d_h2, jnp.bfloat16)
    b2_p = pad2(b2, 1, d_h2, jnp.float32)
    w3_p = pad2(w3, d_h2, act_dim, jnp.bfloat16)
    b3_p = jnp.atleast_2d(b3).astype(jnp.float32)
    loc_p = jnp.atleast_2d(loc).astype(jnp.float32)
    scale_p = jnp.atleast_2d(scale).astype(jnp.float32)

    # Parameters revisit block (0, 0) every step -> resident in VMEM, DMA'd once.
    resident = lambda shape: pl.BlockSpec(shape, lambda i: (0, 0))

    out_dtype = obs.dtype
    flops = 2 * batch * (obs_dim * d_h1 + d_h1 * d_h2 + d_h2 * act_dim)
    bytes_accessed = (
        batch * obs_dim * obs.dtype.itemsize                       # obs (streamed)
        + (w1_p.size + w2_p.size + w3_p.size) * 2                  # bf16 weights
        + (b1_p.size + b2_p.size + b3_p.size
           + loc_p.size + scale_p.size) * 4                        # f32 biases/bounds
        + batch * act_dim * jnp.dtype(out_dtype).itemsize)         # unpadded output

    out = pl.pallas_call(
        policy_kernel,
        out_shape=jax.ShapeDtypeStruct((batch, act_dim), out_dtype),
        grid_spec=pltpu.PrefetchScalarGridSpec(
            num_scalar_prefetch=0,
            grid=grid,
            in_specs=[
                # obs streamed per batch tile, unpadded (last dim == full dim).
                pl.BlockSpec((bm, obs_dim), lambda i: (i, 0)),
                resident((obs_dim, d_h1)), resident((1, d_h1)),   # W1, b1
                resident((d_h1, d_h2)), resident((1, d_h2)),      # W2, b2
                resident((d_h2, act_dim)), resident((1, act_dim)),  # W3, b3
                resident((1, act_dim)), resident((1, act_dim)),   # loc, scale
            ],
            # Unpadded output block: partial last batch tile is bounds-checked
            # by Pallas (out-of-bounds rows dropped), so no wrapper slice.
            out_specs=pl.BlockSpec((bm, act_dim), lambda i: (i, 0)),
        ),
        compiler_params=pltpu.CompilerParams(
            dimension_semantics=("parallel",)),
        cost_estimate=pl.CostEstimate(
            flops=flops,
            transcendentals=batch * act_dim,
            bytes_accessed=bytes_accessed),
    )(obs, w1_p, b1_p, w2_p, b2_p, w3_p, b3_p, loc_p, scale_p)

    return out


def init_params(key, obs_dim, hidden, act_dim, low, high):
    """Deterministic synthetic parameter init (fan-in scaled normal)."""
    ks = jax.random.split(key, 6)

    def dense(kw, kb, n_in, n_out):
        w = jax.random.normal(kw, (n_in, n_out), jnp.float32) / jnp.sqrt(n_in)
        b = jax.random.normal(kb, (1, n_out), jnp.float32) * 0.01
        return w, b

    w1, b1 = dense(ks[0], ks[1], obs_dim, hidden)
    w2, b2 = dense(ks[2], ks[3], hidden, hidden)
    w3, b3 = dense(ks[4], ks[5], hidden, act_dim)
    loc = ((high + low) / 2.0) * jnp.ones((1, act_dim), jnp.float32)
    scale = ((high - low) / 2.0) * jnp.ones((1, act_dim), jnp.float32)
    return (w1, b1, w2, b2, w3, b3, loc, scale)


def reference_policy(obs, params):
    """Plain-JAX f32 reference of the same forward pass."""
    w1, b1, w2, b2, w3, b3, loc, scale = params
    h1 = jnp.maximum(obs @ w1 + b1, 0.0)
    h2 = jnp.maximum(h1 @ w2 + b2, 0.0)
    return loc + scale * jnp.tanh(h2 @ w3 + b3)


if __name__ == "__main__":
    key = jax.random.PRNGKey(0)
    k_obs, k_params = jax.random.split(key)

    batch, obs_dim, hidden, act_dim = 2, 16, 32, 4
    action_low, action_high = -1.0, 1.0

    obs = jax.random.normal(k_obs, (batch, obs_dim), jnp.float32)
    params = init_params(k_params, obs_dim, hidden, act_dim,
                         action_low, action_high)

    action = deterministic_policy_action(obs, params)
    action = jax.block_until_ready(action)

    ref = reference_policy(obs, params)
    assert action.shape == (batch, act_dim)
    # bf16 matmul operands (f32 accumulation) -> loosened tolerance vs f32 ref.
    assert jnp.allclose(action, ref, atol=2e-2, rtol=2e-2)

    print("KERNEL_OK")
</pallas_src>

<mosaic_0001>
module attributes {stable_mosaic.version = 11 : i64} {
  func.func @policy_kernel(%arg0: i32, %arg1: memref<8x16xf32, #tpu.memory_space<vmem>>, %arg2: memref<16x128xbf16, #tpu.memory_space<vmem>>, %arg3: memref<1x128xf32, #tpu.memory_space<vmem>>, %arg4: memref<128x128xbf16, #tpu.memory_space<vmem>>, %arg5: memref<1x128xf32, #tpu.memory_space<vmem>>, %arg6: memref<128x4xbf16, #tpu.memory_space<vmem>>, %arg7: memref<1x4xf32, #tpu.memory_space<vmem>>, %arg8: memref<1x4xf32, #tpu.memory_space<vmem>>, %arg9: memref<1x4xf32, #tpu.memory_space<vmem>>, %arg10: memref<8x4xf32, #tpu.memory_space<vmem>>) attributes {dimension_semantics = [#tpu.dimension_semantics<parallel>], iteration_bounds = array<i64: 1>, scalar_prefetch = 0 : i64, scratch_operands = 0 : i64, tpu.core_type = #tpu.core_type<tc>, window_params = [{transform_indices = @transform_0, window_bounds = array<i64: 8, 16>}, {pipeline_mode = #tpu.pipeline_mode<synchronous>, transform_indices = @transform_1, window_bounds = array<i64: 16, 128>}, {pipeline_mode = #tpu.pipeline_mode<synchronous>, transform_indices = @transform_2, window_bounds = array<i64: 1, 128>}, {pipeline_mode = #tpu.pipeline_mode<synchronous>, transform_indices = @transform_3, window_bounds = array<i64: 128, 128>}, {pipeline_mode = #tpu.pipeline_mode<synchronous>, transform_indices = @transform_4, window_bounds = array<i64: 1, 128>}, {pipeline_mode = #tpu.pipeline_mode<synchronous>, transform_indices = @transform_5, window_bounds = array<i64: 128, 4>}, {pipeline_mode = #tpu.pipeline_mode<synchronous>, transform_indices = @transform_6, window_bounds = array<i64: 1, 4>}, {pipeline_mode = #tpu.pipeline_mode<synchronous>, transform_indices = @transform_7, window_bounds = array<i64: 1, 4>}, {pipeline_mode = #tpu.pipeline_mode<synchronous>, transform_indices = @transform_8, window_bounds = array<i64: 1, 4>}, {transform_indices = @transform_9, window_bounds = array<i64: 8, 4>}]} {
    %c0 = arith.constant 0 : index
    %c0_0 = arith.constant 0 : index
    %0 = vector.load %arg1[%c0, %c0_0] : memref<8x16xf32, #tpu.memory_space<vmem>>, vector<8x16xf32>
    %1 = arith.truncf %0 : vector<8x16xf32> to vector<8x16xbf16>
    %c0_1 = arith.constant 0 : index
    %c0_2 = arith.constant 0 : index
    %2 = vector.load %arg2[%c0_1, %c0_2] : memref<16x128xbf16, #tpu.memory_space<vmem>>, vector<16x128xbf16>
    %cst = arith.constant dense<0.000000e+00> : vector<8x128xf32>
    %3 = tpu.matmul %1, %2, %cst {dimension_numbers = #tpu.dot_dimension_numbers<[1], [0], [0], [1], [0, 0, 1, 1], [], []>} : vector<8x16xbf16>, vector<16x128xbf16>, vector<8x128xf32> -> vector<8x128xf32>
    %c0_3 = arith.constant 0 : index
    %c0_4 = arith.constant 0 : index
    %4 = vector.load %arg3[%c0_3, %c0_4] : memref<1x128xf32, #tpu.memory_space<vmem>>, vector<1x128xf32>
    %5 = vector.broadcast %4 : vector<1x128xf32> to vector<8x128xf32>
    %6 = arith.addf %3, %5 : vector<8x128xf32>
    %cst_5 = arith.constant 0.000000e+00 : f32
    %7 = vector.broadcast %cst_5 : f32 to vector<8x128xf32>
    %8 = arith.maximumf %6, %7 : vector<8x128xf32>
    %9 = arith.truncf %8 : vector<8x128xf32> to vector<8x128xbf16>
    %c0_6 = arith.constant 0 : index
    %c0_7 = arith.constant 0 : index
    %10 = vector.load %arg4[%c0_6, %c0_7] : memref<128x128xbf16, #tpu.memory_space<vmem>>, vector<128x128xbf16>
    %cst_8 = arith.constant dense<0.000000e+00> : vector<8x128xf32>
    %11 = tpu.matmul %9, %10, %cst_8 {dimension_numbers = #tpu.dot_dimension_numbers<[1], [0], [0], [1], [0, 0, 1, 1], [], []>} : vector<8x128xbf16>, vector<128x128xbf16>, vector<8x128xf32> -> vector<8x128xf32>
    %c0_9 = arith.constant 0 : index
    %c0_10 = arith.constant 0 : index
    %12 = vector.load %arg5[%c0_9, %c0_10] : memref<1x128xf32, #tpu.memory_space<vmem>>, vector<1x128xf32>
    %13 = vector.broadcast %12 : vector<1x128xf32> to vector<8x128xf32>
    %14 = arith.addf %11, %13 : vector<8x128xf32>
    %cst_11 = arith.constant 0.000000e+00 : f32
    %15 = vector.broadcast %cst_11 : f32 to vector<8x128xf32>
    %16 = arith.maximumf %14, %15 : vector<8x128xf32>
    %17 = arith.truncf %16 : vector<8x128xf32> to vector<8x128xbf16>
    %c0_12 = arith.constant 0 : index
    %c0_13 = arith.constant 0 : index
    %18 = vector.load %arg6[%c0_12, %c0_13] : memref<128x4xbf16, #tpu.memory_space<vmem>>, vector<128x4xbf16>
    %cst_14 = arith.constant dense<0.000000e+00> : vector<8x4xf32>
    %19 = tpu.matmul %17, %18, %cst_14 {dimension_numbers = #tpu.dot_dimension_numbers<[1], [0], [0], [1], [0, 0, 1, 1], [], []>} : vector<8x128xbf16>, vector<128x4xbf16>, vector<8x4xf32> -> vector<8x4xf32>
    %c0_15 = arith.constant 0 : index
    %c0_16 = arith.constant 0 : index
    %20 = vector.load %arg7[%c0_15, %c0_16] : memref<1x4xf32, #tpu.memory_space<vmem>>, vector<1x4xf32>
    %21 = vector.broadcast %20 : vector<1x4xf32> to vector<8x4xf32>
    %22 = arith.addf %19, %21 : vector<8x4xf32>
    %c0_17 = arith.constant 0 : index
    %c0_18 = arith.constant 0 : index
    %23 = vector.load %arg8[%c0_17, %c0_18] : memref<1x4xf32, #tpu.memory_space<vmem>>, vector<1x4xf32>
    %c0_19 = arith.constant 0 : index
    %c0_20 = arith.constant 0 : index
    %24 = vector.load %arg9[%c0_19, %c0_20] : memref<1x4xf32, #tpu.memory_space<vmem>>, vector<1x4xf32>
    %25 = math.tanh %22 : vector<8x4xf32>
    %26 = vector.broadcast %24 : vector<1x4xf32> to vector<8x4xf32>
    %27 = arith.mulf %26, %25 : vector<8x4xf32>
    %28 = vector.broadcast %23 : vector<1x4xf32> to vector<8x4xf32>
    %29 = arith.addf %28, %27 : vector<8x4xf32>
    %c0_21 = arith.constant 0 : index
    %c0_22 = arith.constant 0 : index
    %30 = vector.load %arg10[%c0_21, %c0_22] : memref<8x4xf32, #tpu.memory_space<vmem>>, vector<8x4xf32>
    tpu.vector_store %arg10[%c0_21, %c0_22], %29 {strides = array<i32>} : memref<8x4xf32, #tpu.memory_space<vmem>>, vector<8x4xf32>,
    return
  }
  func.func @transform_0(%arg0: i32) -> (i32, i32) {
    %c0_i32 = arith.constant 0 : i32
    %c0_i32_0 = arith.constant 0 : i32
    return %arg0, %c0_i32 : i32, i32
  }
  func.func @transform_1(%arg0: i32) -> (i32, i32) {
    %c0_i32 = arith.constant 0 : i32
    %c0_i32_0 = arith.constant 0 : i32
    %c0_i32_1 = arith.constant 0 : i32
    return %c0_i32, %c0_i32_0 : i32, i32
  }
  func.func @transform_2(%arg0: i32) -> (i32, i32) {
    %c0_i32 = arith.constant 0 : i32
    %c0_i32_0 = arith.constant 0 : i32
    %c0_i32_1 = arith.constant 0 : i32
    return %c0_i32, %c0_i32_0 : i32, i32
  }
  func.func @transform_3(%arg0: i32) -> (i32, i32) {
    %c0_i32 = arith.constant 0 : i32
    %c0_i32_0 = arith.constant 0 : i32
    %c0_i32_1 = arith.constant 0 : i32
    return %c0_i32, %c0_i32_0 : i32, i32
  }
  func.func @transform_4(%arg0: i32) -> (i32, i32) {
    %c0_i32 = arith.constant 0 : i32
    %c0_i32_0 = arith.constant 0 : i32
    %c0_i32_1 = arith.constant 0 : i32
    return %c0_i32, %c0_i32_0 : i32, i32
  }
  func.func @transform_5(%arg0: i32) -> (i32, i32) {
    %c0_i32 = arith.constant 0 : i32
    %c0_i32_0 = arith.constant 0 : i32
    %c0_i32_1 = arith.constant 0 : i32
    return %c0_i32, %c0_i32_0 : i32, i32
  }
  func.func @transform_6(%arg0: i32) -> (i32, i32) {
    %c0_i32 = arith.constant 0 : i32
    %c0_i32_0 = arith.constant 0 : i32
    %c0_i32_1 = arith.constant 0 : i32
    return %c0_i32, %c0_i32_0 : i32, i32
  }
  func.func @transform_7(%arg0: i32) -> (i32, i32) {
    %c0_i32 = arith.constant 0 : i32
    %c0_i32_0 = arith.constant 0 : i32
    %c0_i32_1 = arith.constant 0 : i32
    return %c0_i32, %c0_i32_0 : i32, i32
  }
  func.func @transform_8(%arg0: i32) -> (i32, i32) {
    %c0_i32 = arith.constant 0 : i32
    %c0_i32_0 = arith.constant 0 : i32
    %c0_i32_1 = arith.constant 0 : i32
    return %c0_i32, %c0_i32_0 : i32, i32
  }
  func.func @transform_9(%arg0: i32) -> (i32, i32) {
    %c0_i32 = arith.constant 0 : i32
    %c0_i32_0 = arith.constant 0 : i32
    return %arg0, %c0_i32 : i32, i32
  }
}

</mosaic_0001>

<bundles_post_ra>
// kernel: tpu_custom_call.1
= control target key start
LH: loop header
LB: loop body
LE: loop exit
PB: predicated region body
PF: predicated region fallthrough
CT: control target
= control target key end

     0   :  { %14 = vsyncpa [#allocation3], 0  ;;  %s601_s0 = inlined_call_operand.vmem [shape: f32[2,16], index: 0, kind: input, shape index: {}]   ;;  %s602_s1 = inlined_call_operand.hbm [shape: bf16[16,128], index: 1, kind: input, shape index: {}]   ;;  %s603_s2 = inlined_call_operand.vmem [shape: f32[1,128], index: 2, kind: input, shape index: {}]   ;;  %s604_s3 = inlined_call_operand.vmem [shape: bf16[128,128], index: 3, kind: input, shape index: {}]   ;;  %s605_s4 = inlined_call_operand.hbm [shape: f32[1,128], index: 4, kind: input, shape index: {}]   ;;  %s606_s5 = inlined_call_operand.vmem [shape: bf16[128,4], index: 5, kind: input, shape index: {}]   ;;  %s607_s6 = inlined_call_operand.vmem [shape: f32[1,4], index: 6, kind: input, shape index: {}]   ;;  %s608_s7 = inlined_call_operand.vmem [shape: f32[1,4], index: 7, kind: input, shape index: {}]   ;;  %s609_s8 = inlined_call_operand.vmem [shape: f32[1,4], index: 8, kind: input, shape index: {}]   ;;  %s610_s9 = inlined_call_operand.hbm [shape: f32[2,4], index: 9, kind: output, shape index: {}]  }
   0x1   :  { %15 = vsyncpa [#allocation6], 0 }
   0x2   :  { %16 = vsyncpa [#allocation4], 0  ;;  %s23_s11 = sshll.u32 %s602_s1, 4  ;;  %s472_s12 = smov [#allocation2]   ;;  %s24_s11 = int_to_ptr.hbm [resolvable:$true] %s23_s11 }
   0x3   :  { %s25_s13 = sshll.u32 %s472_s12, 4  ;;  %s41_s16 = sshll.u32 %s605_s4, 4  ;;  %s26_s13 = int_to_ptr.vmem [resolvable:$true] %s25_s13  ;;  %s42_s16 = int_to_ptr.hbm [resolvable:$true] %s41_s16 }
   0x4   :  { %s473_s17 = smov 64   ;;  %s474_s18 = smov 4  }
   0x5   :  { %31 = dma.hbm_to_vmem [thread:$0]  %s24_s11, 128, %s26_s13, [#allocation3], %s473_s17, %s473_s17, %s474_s18  }
   0x6   :  { %s475_s19 = smov [#allocation5]  }
   0x7   :  { %s43_s20 = sshll.u32 %s475_s19, 4  ;;  %s44_s20 = int_to_ptr.vmem [resolvable:$true] %s43_s20 }
   0x8   :  { %46 = dma.hbm_to_vmem [thread:$0]  %s42_s16, 16, %s44_s20, [#allocation6]  }
   0x9   :  { %466 = dma.done.wait [#allocation3], 128  }
   0xa   :  { %467 = vsyncadd [#allocation3], 4294967168 }
   0xb   :  { %468 = dma.done.wait [#allocation6], 16  }
   0xc   :  { %469 = vsyncadd [#allocation6], 4294967280  ;;  %v363_v0 = vld [vmem:[#allocation2] sm:$0xff]  ;;  %v371_v2 = vld [vmem:[%s604_s3 + $0x38] sm:$0xff]  ;;  %vm78_vm0 = vcmask 130048   ;;  %vm272_vm1 = vcmask 31744  }
   0xd   :  { %v64_v1 = vld [vmem:[%s601_s0] sm:$0xff]  ;;  %89 = vmatpush.bf16.msra.mxu0 %v363_v0  ;;  %165 = vmatpush.bf16.msra.mxu1 %v371_v2  ;;  %v370_v4 = vld [vmem:[%s604_s3 + $0x30] sm:$0xff]  ;;  %v369_v5 = vld [vmem:[%s604_s3 + $0x28] sm:$0xff] }
   0xe   :  { %v65_v3 = vpack.c.bf16 %v64_v1, %v64_v1  ;;  %v368_v6 = vld [vmem:[%s604_s3 + $0x20] sm:$0xff]  ;;  %v367_v7 = vld [vmem:[%s604_s3 + $0x18] sm:$0xff]  ;;  %v366_v8 = vld [vmem:[%s604_s3 + $0x10] sm:$0xff] }
   0xf   :  { %v365_v9 = vld [vmem:[%s604_s3 + $0x8] sm:$0xff]  ;;  %v364_v10 = vld [vmem:[%s604_s3] sm:$0xff]  ;;  %v379_v11 = vld [vmem:[%s606_s5 + $0x38] sm:$0xff] }
  0x10   :  { %298 = vmatmul.msk.bf16.vlgmr.msra.gmra.mxu0 %vm78_vm0, %v65_v3  ;;  %248 = vmatpush.bf16.msra.mxu2 %v379_v11  ;;  %v378_v12 = vld [vmem:[%s606_s5 + $0x30] sm:$0xff]  ;;  %v377_v13 = vld [vmem:[%s606_s5 + $0x28] sm:$0xff]  ;;  %v376_v14 = vld [vmem:[%s606_s5 + $0x20] sm:$0xff] }
  0x11   :  { %166 = vmatpush.bf16.msra.mxu1 %v370_v4  ;;  %v375_v15 = vld [vmem:[%s606_s5 + $0x18] sm:$0xff]  ;;  %v374_v16 = vld [vmem:[%s606_s5 + $0x10] sm:$0xff]  ;;  %v387_v17 = vld [vmem:[%s603_s2] ss:$0 sm:$0xff] }
  0x12   :  { %v373_v23 = vld [vmem:[%s606_s5 + $0x8] sm:$0xff]  ;;  %v372_v24 = vld [vmem:[%s606_s5] sm:$0xff] }
  0x13   :  { %v388_v25 = vld [vmem:[#allocation5] ss:$0 sm:$0xff]  ;;  %v389_v31 = vld [vmem:[%s607_s6] ss:$0 sm:$0xff] }
  0x14   :  { %249 = vmatpush.bf16.msra.mxu2 %v378_v12  ;;  %v390_v34 = vld [vmem:[%s609_s8] ss:$0 sm:$0xff] }
  0x15   :  { %167 = vmatpush.bf16.msra.mxu1 %v369_v5  ;;  %v391_v35 = vld [vmem:[%s608_s7] ss:$0 sm:$0xff] }
  0x18   :  { %250 = vmatpush.bf16.msra.mxu2 %v377_v13 }
  0x19   :  { %168 = vmatpush.bf16.msra.mxu1 %v368_v6 }
  0x1c   :  { %251 = vmatpush.bf16.msra.mxu2 %v376_v14 }
  0x1d   :  { %169 = vmatpush.bf16.msra.mxu1 %v367_v7 }
  0x20   :  { %252 = vmatpush.bf16.msra.mxu2 %v375_v15 }
  0x21   :  { %170 = vmatpush.bf16.msra.mxu1 %v366_v8 }
  0x24   :  { %253 = vmatpush.bf16.msra.mxu2 %v374_v16 }
  0x25   :  { %171 = vmatpush.bf16.msra.mxu1 %v365_v9 }
  0x28   :  { %254 = vmatpush.bf16.msra.mxu2 %v373_v23 }
  0x29   :  { %172 = vmatpush.bf16.msra.mxu1 %v364_v10 }
  0x2c   :  { %255 = vmatpush.bf16.msra.mxu2 %v372_v24 }
  0x8d   :  { %v91_v18 = vpop.f32.mrf.mxu0 }
  0x8e   :  { %v92_v19 = vadd.f32 %v387_v17, %v91_v18 }
  0x90   :  { %v95_v20 = vmax.f32 %v92_v19, 0.0 }
  0x92   :  { %v96_v21 = vpack.c.bf16 %v95_v20, %v95_v20 }
  0x94   :  { %173 = vmatmul.bf16.vlgmr.msra.gmra.mxu1 %v96_v21 }
  0x95   :  { %v93_v22 = vpop.f32.mrf.mxu0 }
 0x111   :  { %v174_v26 = vpop.f32.mrf.mxu1 }
 0x112   :  { %v175_v27 = vadd.f32 %v388_v25, %v174_v26 }
 0x114   :  { %v178_v28 = vmax.f32 %v175_v27, 0.0 }
 0x116   :  { %v179_v29 = vpack.c.bf16 %v178_v28, %v178_v28 }
 0x118   :  { %256 = vmatmul.bf16.vlgmr.msra.gmra.mxu2 %v179_v29 }
 0x119   :  { %v176_v30 = vpop.f32.mrf.mxu1 }
 0x19b   :  { %v257_v32 = vpop.f32.mrf.mxu2 }
 0x19c   :  { %v258_v33 = vadd.f32 %v389_v31, %v257_v32 }
 0x19e   :  { %392 = vtanh.f32 %v258_v33 }
 0x1a3   :  { %v259_v36 = vpop.f32.mrf.mxu2 }
 0x1a4   :  { %v393_v37 = vpop.eup %392 }
 0x1a5   :  { %v267_v38 = vmul.f32 %v393_v37, %v390_v34 }
 0x1a7   :  { %v271_v39 = vadd.f32 %v391_v35, %v267_v38 }
 0x1a9   :  { %273 = vst.msk [vmem:[#allocation7] sm:$0xff] %vm272_vm1, %v271_v39 }
 0x1aa   :  { %277 = vsyncadd [#allocation4], 96  ;;  %s280_s13 = sshll.u32 %s610_s9, 4  ;;  %s476_s14 = smov [#allocation7]   ;;  %s281_s13 = int_to_ptr.hbm [resolvable:$true] %s280_s13 }
 0x1ab   :  { %s278_s15 = sshll.u32 %s476_s14, 4  ;;  %s477_s8 = smov 32   ;;  %s279_s15 = int_to_ptr.vmem [resolvable:$true] %s278_s15 }
 0x1ac   :  { %s478_s16 = smov 2  }
 0x1ad   :  { %286 = dma.vmem_to_hbm [thread:$0]  %s279_s15, 32, %s281_s13, [#allocation4], %s477_s8, %s477_s8, %s478_s16  }
 0x1ae   :  { %470 = dma.done.wait [#allocation4], 128  }
 0x1af   :  { %471 = vsyncadd [#allocation4], 4294967168 }
 0x1b0   :  { %291 = vsyncpa [#allocation3], 1 }
 0x1b1   :  { %292 = vsyncpa [#allocation6], 1 }
 0x1b2   :  { %293 = vsyncpa [#allocation4], 1 }

</bundles_post_ra>
